<compile_context>
chip_gen: v5e
topology: v5e:2x2
jax: 0.10.0
libtpu: 0.0.40
codegen_flags: <defaults>
</compile_context>

<pallas_src>
import functools
import math

import jax
import jax.numpy as jnp
from jax.experimental import pallas as pl
from jax.experimental.pallas import tpu as pltpu

EPS = 1e-5


def _cross_attention_kernel(x_ref, c_ref, lnw_ref, lnb_ref, wqt_ref, wkvt_ref,
                            o_ref, *, n_heads):
    # x_ref:    (1, S,  D)  inputs block for this batch element (also residual)
    # c_ref:    (1, Sk, D)  cross-embeddings block
    # lnw_ref:  (1, D), lnb_ref: (1, D)   LayerNorm affine params
    # wqt_ref:  (D, D)      Wq^T   -> q  = ln(x) @ wqt
    # wkvt_ref: (D, 2D)     Wkv^T  -> kv = c     @ wkvt ; cols [0:D)=K, [D:2D)=V
    # o_ref:    (1, S, D)
    _, S, D = x_ref.shape
    Dh = D // n_heads

    x = x_ref[0].astype(jnp.float32)          # (S, D)  original inputs
    c = c_ref[0].astype(jnp.float32)          # (Sk, D)

    # ---- LayerNorm: one-pass moments + fused affine (2 VPU ops per element).
    inv_d = 1.0 / D
    mean = jnp.sum(x, axis=-1, keepdims=True) * inv_d           # (S, 1)
    ex2 = jnp.sum(x * x, axis=-1, keepdims=True) * inv_d        # (S, 1)
    var = ex2 - mean * mean
    inv = jax.lax.rsqrt(var + EPS)                              # (S, 1)
    w = lnw_ref[...].astype(jnp.float32)                        # (1, D)
    b = lnb_ref[...].astype(jnp.float32)                        # (1, D)
    scale = inv * w                                             # (S, D)
    shift = b - mean * scale                                    # (S, D)
    xn = x * scale + shift                                      # normalized

    # ---- Projections on the MXU (weights pre-transposed, no bias).
    q = jnp.dot(xn, wqt_ref[...].astype(jnp.float32),
                preferred_element_type=jnp.float32)             # (S, D)
    kv = jnp.dot(c, wkvt_ref[...].astype(jnp.float32),
                 preferred_element_type=jnp.float32)            # (Sk, 2D)
    k = kv[:, :D]                                               # (Sk, D)
    v = kv[:, D:]                                               # (Sk, D)

    # ---- Per-head scaled-dot-product attention (static head loop over
    #      contiguous Dh-wide column slices; softmax in f32).
    sm_scale = 1.0 / math.sqrt(Dh)
    head_outs = []
    for h in range(n_heads):
        lo, hi = h * Dh, (h + 1) * Dh
        qh = q[:, lo:hi]                                        # (S,  Dh)
        kh = k[:, lo:hi]                                        # (Sk, Dh)
        vh = v[:, lo:hi]                                        # (Sk, Dh)
        att = jnp.dot(qh, kh.T, preferred_element_type=jnp.float32) * sm_scale
        att = att - jnp.max(att, axis=-1, keepdims=True)
        p = jnp.exp(att)
        p = p / jnp.sum(p, axis=-1, keepdims=True)
        head_outs.append(jnp.dot(p, vh, preferred_element_type=jnp.float32))
    out = jnp.concatenate(head_outs, axis=-1)                   # (S, D)

    # ---- Residual add + single full-width store of this batch's tile.
    o_ref[0] = (out + x).astype(o_ref.dtype)


@functools.partial(jax.jit, static_argnames=("n_heads",))
def cross_attention(inputs, cross_embeddings, ln_weight, ln_bias, wq, wkv, *,
                    n_heads):
    """Forward pass of the PyTorch CrossAttention module.

    inputs, cross_embeddings: (B, S, D).
    wq:  (D, D)   nn.Linear weight layout (out_features, in_features), no bias.
    wkv: (2D, D)  nn.Linear weight layout, no bias (rows [0:D)=K, [D:2D)=V).
    """
    B, S, D = inputs.shape
    Bk, Sk, Dk = cross_embeddings.shape
    assert D == Dk and B == Bk and D % n_heads == 0

    wq_t = wq.T                      # (D, D)
    wkv_t = wkv.T                    # (D, 2D)
    ln_w2 = ln_weight.reshape(1, D)
    ln_b2 = ln_bias.reshape(1, D)

    kernel = functools.partial(_cross_attention_kernel, n_heads=n_heads)

    return pl.pallas_call(
        kernel,
        out_shape=jax.ShapeDtypeStruct((B, S, D), inputs.dtype),
        grid_spec=pltpu.PrefetchScalarGridSpec(
            num_scalar_prefetch=0,
            grid=(B,),
            in_specs=[
                pl.BlockSpec((1, S, D), lambda bi: (bi, 0, 0)),     # inputs
                pl.BlockSpec((1, Sk, D), lambda bi: (bi, 0, 0)),    # cross
                pl.BlockSpec((1, D), lambda bi: (0, 0)),            # ln weight
                pl.BlockSpec((1, D), lambda bi: (0, 0)),            # ln bias
                pl.BlockSpec((D, D), lambda bi: (0, 0)),            # Wq^T
                pl.BlockSpec((D, 2 * D), lambda bi: (0, 0)),        # Wkv^T
            ],
            out_specs=pl.BlockSpec((1, S, D), lambda bi: (bi, 0, 0)),
        ),
        compiler_params=pltpu.CompilerParams(
            dimension_semantics=("parallel",),
        ),
    )(inputs, cross_embeddings, ln_w2, ln_b2, wq_t, wkv_t)


if __name__ == "__main__":
    batch, seq, hidden, n_heads = 2, 8, 32, 4
    key = jax.random.PRNGKey(0)
    k1, k2, k3, k4 = jax.random.split(key, 4)

    x = jax.random.normal(k1, (batch, seq, hidden), dtype=jnp.float32)
    cross = jax.random.normal(k2, (batch, seq, hidden), dtype=jnp.float32)

    # PyTorch nn.Linear-style weights (out_features, in_features), no bias.
    wq = jax.random.normal(k3, (hidden, hidden), dtype=jnp.float32) * 0.1
    wkv = jax.random.normal(k4, (2 * hidden, hidden), dtype=jnp.float32) * 0.1
    ln_w = jnp.ones((hidden,), dtype=jnp.float32)
    ln_b = jnp.zeros((hidden,), dtype=jnp.float32)

    out = cross_attention(x, cross, ln_w, ln_b, wq, wkv, n_heads=n_heads)
    jax.block_until_ready(out)

    # ---- Pure-JAX reference of the PyTorch forward pass.
    mean = jnp.mean(x, axis=-1, keepdims=True)
    var = jnp.mean((x - mean) ** 2, axis=-1, keepdims=True)
    xn = (x - mean) / jnp.sqrt(var + EPS) * ln_w + ln_b
    q = xn @ wq.T
    kv = cross @ wkv.T
    kk, vv = kv[..., :hidden], kv[..., hidden:]
    dh = hidden // n_heads

    def split_heads(t):
        return t.reshape(batch, seq, n_heads, dh).transpose(0, 2, 1, 3)

    qh, kh, vh = split_heads(q), split_heads(kk), split_heads(vv)
    att = jnp.einsum("bhqd,bhkd->bhqk", qh, kh) / math.sqrt(dh)
    att = jax.nn.softmax(att, axis=-1)
    ref = jnp.einsum("bhqk,bhkd->bhqd", att, vh)
    ref = ref.transpose(0, 2, 1, 3).reshape(batch, seq, hidden) + x

    assert out.shape == x.shape
    assert jnp.max(jnp.abs(out - ref)) < 2e-4, "mismatch vs reference"

    print("KERNEL_OK")
</pallas_src>

<mosaic_0001>
module attributes {stable_mosaic.version = 11 : i64} {
  func.func @_cross_attention_kernel(%arg0: i32, %arg1: memref<1x8x32xf32, #tpu.memory_space<vmem>>, %arg2: memref<1x8x32xf32, #tpu.memory_space<vmem>>, %arg3: memref<1x32xf32, #tpu.memory_space<vmem>>, %arg4: memref<1x32xf32, #tpu.memory_space<vmem>>, %arg5: memref<32x32xf32, #tpu.memory_space<vmem>>, %arg6: memref<32x64xf32, #tpu.memory_space<vmem>>, %arg7: memref<1x8x32xf32, #tpu.memory_space<vmem>>) attributes {dimension_semantics = [#tpu.dimension_semantics<parallel>], iteration_bounds = array<i64: 2>, scalar_prefetch = 0 : i64, scratch_operands = 0 : i64, tpu.core_type = #tpu.core_type<tc>, window_params = [{transform_indices = @transform_0, window_bounds = array<i64: 1, 8, 32>}, {transform_indices = @transform_1, window_bounds = array<i64: 1, 8, 32>}, {pipeline_mode = #tpu.pipeline_mode<synchronous>, transform_indices = @transform_2, window_bounds = array<i64: 1, 32>}, {pipeline_mode = #tpu.pipeline_mode<synchronous>, transform_indices = @transform_3, window_bounds = array<i64: 1, 32>}, {pipeline_mode = #tpu.pipeline_mode<synchronous>, transform_indices = @transform_4, window_bounds = array<i64: 32, 32>}, {pipeline_mode = #tpu.pipeline_mode<synchronous>, transform_indices = @transform_5, window_bounds = array<i64: 32, 64>}, {transform_indices = @transform_6, window_bounds = array<i64: 1, 8, 32>}]} {
    %c0 = arith.constant 0 : index
    %c0_0 = arith.constant 0 : index
    %c0_1 = arith.constant 0 : index
    %0 = vector.load %arg1[%c0, %c0_0, %c0_1] : memref<1x8x32xf32, #tpu.memory_space<vmem>>, vector<1x8x32xf32>
    %1 = vector.shape_cast %0 : vector<1x8x32xf32> to vector<8x32xf32>
    %c0_2 = arith.constant 0 : index
    %c0_3 = arith.constant 0 : index
    %c0_4 = arith.constant 0 : index
    %2 = vector.load %arg2[%c0_2, %c0_3, %c0_4] : memref<1x8x32xf32, #tpu.memory_space<vmem>>, vector<1x8x32xf32>
    %3 = vector.shape_cast %2 : vector<1x8x32xf32> to vector<8x32xf32>
    %cst = arith.constant dense<0.000000e+00> : vector<8xf32>
    %4 = vector.multi_reduction <add>, %1, %cst [1] : vector<8x32xf32> to vector<8xf32>
    %5 = vector.shape_cast %4 : vector<8xf32> to vector<8x1xf32>
    %cst_5 = arith.constant 3.125000e-02 : f32
    %6 = vector.broadcast %cst_5 : f32 to vector<8x1xf32>
    %7 = arith.mulf %5, %6 : vector<8x1xf32>
    %8 = arith.mulf %1, %1 : vector<8x32xf32>
    %cst_6 = arith.constant dense<0.000000e+00> : vector<8xf32>
    %9 = vector.multi_reduction <add>, %8, %cst_6 [1] : vector<8x32xf32> to vector<8xf32>
    %10 = vector.shape_cast %9 : vector<8xf32> to vector<8x1xf32>
    %cst_7 = arith.constant 3.125000e-02 : f32
    %11 = vector.broadcast %cst_7 : f32 to vector<8x1xf32>
    %12 = arith.mulf %10, %11 : vector<8x1xf32>
    %13 = arith.mulf %7, %7 : vector<8x1xf32>
    %14 = arith.subf %12, %13 : vector<8x1xf32>
    %cst_8 = arith.constant 9.99999974E-6 : f32
    %15 = vector.broadcast %cst_8 : f32 to vector<8x1xf32>
    %16 = arith.addf %14, %15 : vector<8x1xf32>
    %17 = math.rsqrt %16 : vector<8x1xf32>
    %c0_9 = arith.constant 0 : index
    %c0_10 = arith.constant 0 : index
    %18 = vector.load %arg3[%c0_9, %c0_10] : memref<1x32xf32, #tpu.memory_space<vmem>>, vector<1x32xf32>
    %c0_11 = arith.constant 0 : index
    %c0_12 = arith.constant 0 : index
    %19 = vector.load %arg4[%c0_11, %c0_12] : memref<1x32xf32, #tpu.memory_space<vmem>>, vector<1x32xf32>
    %20 = vector.broadcast %17 : vector<8x1xf32> to vector<8x32xf32>
    %21 = vector.broadcast %18 : vector<1x32xf32> to vector<8x32xf32>
    %22 = arith.mulf %20, %21 : vector<8x32xf32>
    %23 = vector.broadcast %7 : vector<8x1xf32> to vector<8x32xf32>
    %24 = arith.mulf %23, %22 : vector<8x32xf32>
    %25 = vector.broadcast %19 : vector<1x32xf32> to vector<8x32xf32>
    %26 = arith.subf %25, %24 : vector<8x32xf32>
    %27 = arith.mulf %1, %22 : vector<8x32xf32>
    %28 = arith.addf %27, %26 : vector<8x32xf32>
    %c0_13 = arith.constant 0 : index
    %c0_14 = arith.constant 0 : index
    %29 = vector.load %arg5[%c0_13, %c0_14] : memref<32x32xf32, #tpu.memory_space<vmem>>, vector<32x32xf32>
    %cst_15 = arith.constant dense<0.000000e+00> : vector<8x32xf32>
    %30 = tpu.matmul %28, %29, %cst_15 {dimension_numbers = #tpu.dot_dimension_numbers<[1], [0], [0], [1], [0, 0, 1, 1], [], []>} : vector<8x32xf32>, vector<32x32xf32>, vector<8x32xf32> -> vector<8x32xf32>
    %c0_16 = arith.constant 0 : index
    %c0_17 = arith.constant 0 : index
    %31 = vector.load %arg6[%c0_16, %c0_17] : memref<32x64xf32, #tpu.memory_space<vmem>>, vector<32x64xf32>
    %cst_18 = arith.constant dense<0.000000e+00> : vector<8x64xf32>
    %32 = tpu.matmul %3, %31, %cst_18 {dimension_numbers = #tpu.dot_dimension_numbers<[1], [0], [0], [1], [0, 0, 1, 1], [], []>} : vector<8x32xf32>, vector<32x64xf32>, vector<8x64xf32> -> vector<8x64xf32>
    %33 = vector.extract_strided_slice %32 {offsets = [0, 0], sizes = [8, 32], strides = [1, 1]} : vector<8x64xf32> to vector<8x32xf32>
    %34 = vector.extract_strided_slice %32 {offsets = [0, 32], sizes = [8, 32], strides = [1, 1]} : vector<8x64xf32> to vector<8x32xf32>
    %35 = vector.extract_strided_slice %30 {offsets = [0, 0], sizes = [8, 8], strides = [1, 1]} : vector<8x32xf32> to vector<8x8xf32>
    %36 = vector.extract_strided_slice %33 {offsets = [0, 0], sizes = [8, 8], strides = [1, 1]} : vector<8x32xf32> to vector<8x8xf32>
    %37 = vector.extract_strided_slice %34 {offsets = [0, 0], sizes = [8, 8], strides = [1, 1]} : vector<8x32xf32> to vector<8x8xf32>
    %38 = tpu.transpose %36, [1, 0] : vector<8x8xf32> -> vector<8x8xf32>
    %cst_19 = arith.constant dense<0.000000e+00> : vector<8x8xf32>
    %39 = tpu.matmul %35, %38, %cst_19 {dimension_numbers = #tpu.dot_dimension_numbers<[1], [0], [0], [1], [0, 0, 1, 1], [], []>} : vector<8x8xf32>, vector<8x8xf32>, vector<8x8xf32> -> vector<8x8xf32>
    %cst_20 = arith.constant 0.353553385 : f32
    %40 = vector.broadcast %cst_20 : f32 to vector<8x8xf32>
    %41 = arith.mulf %39, %40 : vector<8x8xf32>
    %cst_21 = arith.constant dense<0xFF800000> : vector<8xf32>
    %42 = vector.multi_reduction <maximumf>, %41, %cst_21 [1] : vector<8x8xf32> to vector<8xf32>
    %43 = vector.shape_cast %42 : vector<8xf32> to vector<8x1xf32>
    %44 = vector.broadcast %43 : vector<8x1xf32> to vector<8x8xf32>
    %45 = arith.subf %41, %44 : vector<8x8xf32>
    %46 = math.exp %45 : vector<8x8xf32>
    %cst_22 = arith.constant dense<0.000000e+00> : vector<8xf32>
    %47 = vector.multi_reduction <add>, %46, %cst_22 [1] : vector<8x8xf32> to vector<8xf32>
    %48 = vector.shape_cast %47 : vector<8xf32> to vector<8x1xf32>
    %49 = vector.broadcast %48 : vector<8x1xf32> to vector<8x8xf32>
    %50 = arith.divf %46, %49 : vector<8x8xf32>
    %cst_23 = arith.constant dense<0.000000e+00> : vector<8x8xf32>
    %51 = tpu.matmul %50, %37, %cst_23 {dimension_numbers = #tpu.dot_dimension_numbers<[1], [0], [0], [1], [0, 0, 1, 1], [], []>} : vector<8x8xf32>, vector<8x8xf32>, vector<8x8xf32> -> vector<8x8xf32>
    %52 = vector.extract_strided_slice %30 {offsets = [0, 8], sizes = [8, 8], strides = [1, 1]} : vector<8x32xf32> to vector<8x8xf32>
    %53 = vector.extract_strided_slice %33 {offsets = [0, 8], sizes = [8, 8], strides = [1, 1]} : vector<8x32xf32> to vector<8x8xf32>
    %54 = vector.extract_strided_slice %34 {offsets = [0, 8], sizes = [8, 8], strides = [1, 1]} : vector<8x32xf32> to vector<8x8xf32>
    %55 = tpu.transpose %53, [1, 0] : vector<8x8xf32> -> vector<8x8xf32>
    %cst_24 = arith.constant dense<0.000000e+00> : vector<8x8xf32>
    %56 = tpu.matmul %52, %55, %cst_24 {dimension_numbers = #tpu.dot_dimension_numbers<[1], [0], [0], [1], [0, 0, 1, 1], [], []>} : vector<8x8xf32>, vector<8x8xf32>, vector<8x8xf32> -> vector<8x8xf32>
    %cst_25 = arith.constant 0.353553385 : f32
    %57 = vector.broadcast %cst_25 : f32 to vector<8x8xf32>
    %58 = arith.mulf %56, %57 : vector<8x8xf32>
    %cst_26 = arith.constant dense<0xFF800000> : vector<8xf32>
    %59 = vector.multi_reduction <maximumf>, %58, %cst_26 [1] : vector<8x8xf32> to vector<8xf32>
    %60 = vector.shape_cast %59 : vector<8xf32> to vector<8x1xf32>
    %61 = vector.broadcast %60 : vector<8x1xf32> to vector<8x8xf32>
    %62 = arith.subf %58, %61 : vector<8x8xf32>
    %63 = math.exp %62 : vector<8x8xf32>
    %cst_27 = arith.constant dense<0.000000e+00> : vector<8xf32>
    %64 = vector.multi_reduction <add>, %63, %cst_27 [1] : vector<8x8xf32> to vector<8xf32>
    %65 = vector.shape_cast %64 : vector<8xf32> to vector<8x1xf32>
    %66 = vector.broadcast %65 : vector<8x1xf32> to vector<8x8xf32>
    %67 = arith.divf %63, %66 : vector<8x8xf32>
    %cst_28 = arith.constant dense<0.000000e+00> : vector<8x8xf32>
    %68 = tpu.matmul %67, %54, %cst_28 {dimension_numbers = #tpu.dot_dimension_numbers<[1], [0], [0], [1], [0, 0, 1, 1], [], []>} : vector<8x8xf32>, vector<8x8xf32>, vector<8x8xf32> -> vector<8x8xf32>
    %69 = vector.extract_strided_slice %30 {offsets = [0, 16], sizes = [8, 8], strides = [1, 1]} : vector<8x32xf32> to vector<8x8xf32>
    %70 = vector.extract_strided_slice %33 {offsets = [0, 16], sizes = [8, 8], strides = [1, 1]} : vector<8x32xf32> to vector<8x8xf32>
    %71 = vector.extract_strided_slice %34 {offsets = [0, 16], sizes = [8, 8], strides = [1, 1]} : vector<8x32xf32> to vector<8x8xf32>
    %72 = tpu.transpose %70, [1, 0] : vector<8x8xf32> -> vector<8x8xf32>
    %cst_29 = arith.constant dense<0.000000e+00> : vector<8x8xf32>
    %73 = tpu.matmul %69, %72, %cst_29 {dimension_numbers = #tpu.dot_dimension_numbers<[1], [0], [0], [1], [0, 0, 1, 1], [], []>} : vector<8x8xf32>, vector<8x8xf32>, vector<8x8xf32> -> vector<8x8xf32>
    %cst_30 = arith.constant 0.353553385 : f32
    %74 = vector.broadcast %cst_30 : f32 to vector<8x8xf32>
    %75 = arith.mulf %73, %74 : vector<8x8xf32>
    %cst_31 = arith.constant dense<0xFF800000> : vector<8xf32>
    %76 = vector.multi_reduction <maximumf>, %75, %cst_31 [1] : vector<8x8xf32> to vector<8xf32>
    %77 = vector.shape_cast %76 : vector<8xf32> to vector<8x1xf32>
    %78 = vector.broadcast %77 : vector<8x1xf32> to vector<8x8xf32>
    %79 = arith.subf %75, %78 : vector<8x8xf32>
    %80 = math.exp %79 : vector<8x8xf32>
    %cst_32 = arith.constant dense<0.000000e+00> : vector<8xf32>
    %81 = vector.multi_reduction <add>, %80, %cst_32 [1] : vector<8x8xf32> to vector<8xf32>
    %82 = vector.shape_cast %81 : vector<8xf32> to vector<8x1xf32>
    %83 = vector.broadcast %82 : vector<8x1xf32> to vector<8x8xf32>
    %84 = arith.divf %80, %83 : vector<8x8xf32>
    %cst_33 = arith.constant dense<0.000000e+00> : vector<8x8xf32>
    %85 = tpu.matmul %84, %71, %cst_33 {dimension_numbers = #tpu.dot_dimension_numbers<[1], [0], [0], [1], [0, 0, 1, 1], [], []>} : vector<8x8xf32>, vector<8x8xf32>, vector<8x8xf32> -> vector<8x8xf32>
    %86 = vector.extract_strided_slice %30 {offsets = [0, 24], sizes = [8, 8], strides = [1, 1]} : vector<8x32xf32> to vector<8x8xf32>
    %87 = vector.extract_strided_slice %33 {offsets = [0, 24], sizes = [8, 8], strides = [1, 1]} : vector<8x32xf32> to vector<8x8xf32>
    %88 = vector.extract_strided_slice %34 {offsets = [0, 24], sizes = [8, 8], strides = [1, 1]} : vector<8x32xf32> to vector<8x8xf32>
    %89 = tpu.transpose %87, [1, 0] : vector<8x8xf32> -> vector<8x8xf32>
    %cst_34 = arith.constant dense<0.000000e+00> : vector<8x8xf32>
    %90 = tpu.matmul %86, %89, %cst_34 {dimension_numbers = #tpu.dot_dimension_numbers<[1], [0], [0], [1], [0, 0, 1, 1], [], []>} : vector<8x8xf32>, vector<8x8xf32>, vector<8x8xf32> -> vector<8x8xf32>
    %cst_35 = arith.constant 0.353553385 : f32
    %91 = vector.broadcast %cst_35 : f32 to vector<8x8xf32>
    %92 = arith.mulf %90, %91 : vector<8x8xf32>
    %cst_36 = arith.constant dense<0xFF800000> : vector<8xf32>
    %93 = vector.multi_reduction <maximumf>, %92, %cst_36 [1] : vector<8x8xf32> to vector<8xf32>
    %94 = vector.shape_cast %93 : vector<8xf32> to vector<8x1xf32>
    %95 = vector.broadcast %94 : vector<8x1xf32> to vector<8x8xf32>
    %96 = arith.subf %92, %95 : vector<8x8xf32>
    %97 = math.exp %96 : vector<8x8xf32>
    %cst_37 = arith.constant dense<0.000000e+00> : vector<8xf32>
    %98 = vector.multi_reduction <add>, %97, %cst_37 [1] : vector<8x8xf32> to vector<8xf32>
    %99 = vector.shape_cast %98 : vector<8xf32> to vector<8x1xf32>
    %100 = vector.broadcast %99 : vector<8x1xf32> to vector<8x8xf32>
    %101 = arith.divf %97, %100 : vector<8x8xf32>
    %cst_38 = arith.constant dense<0.000000e+00> : vector<8x8xf32>
    %102 = tpu.matmul %101, %88, %cst_38 {dimension_numbers = #tpu.dot_dimension_numbers<[1], [0], [0], [1], [0, 0, 1, 1], [], []>} : vector<8x8xf32>, vector<8x8xf32>, vector<8x8xf32> -> vector<8x8xf32>
    %103 = tpu.concatenate %51, %68, %85, %102 in 1 : vector<8x8xf32>, vector<8x8xf32>, vector<8x8xf32>, vector<8x8xf32> -> vector<8x32xf32>
    %104 = arith.addf %103, %1 : vector<8x32xf32>
    %c0_39 = arith.constant 0 : index
    %c0_40 = arith.constant 0 : index
    %c0_41 = arith.constant 0 : index
    %105 = vector.load %arg7[%c0_39, %c0_40, %c0_41] : memref<1x8x32xf32, #tpu.memory_space<vmem>>, vector<1x8x32xf32>
    %106 = vector.shape_cast %105 : vector<1x8x32xf32> to vector<8x32xf32>
    %107 = vector.shape_cast %104 : vector<8x32xf32> to vector<1x8x32xf32>
    tpu.vector_store %arg7[%c0_39, %c0_40, %c0_41], %107 {strides = array<i32>} : memref<1x8x32xf32, #tpu.memory_space<vmem>>, vector<1x8x32xf32>,
    return
  }
  func.func @transform_0(%arg0: i32) -> (i32, i32, i32) {
    %c0_i32 = arith.constant 0 : i32
    %c0_i32_0 = arith.constant 0 : i32
    %c0_i32_1 = arith.constant 0 : i32
    return %arg0, %c0_i32, %c0_i32_0 : i32, i32, i32
  }
  func.func @transform_1(%arg0: i32) -> (i32, i32, i32) {
    %c0_i32 = arith.constant 0 : i32
    %c0_i32_0 = arith.constant 0 : i32
    %c0_i32_1 = arith.constant 0 : i32
    return %arg0, %c0_i32, %c0_i32_0 : i32, i32, i32
  }
  func.func @transform_2(%arg0: i32) -> (i32, i32) {
    %c0_i32 = arith.constant 0 : i32
    %c0_i32_0 = arith.constant 0 : i32
    %c0_i32_1 = arith.constant 0 : i32
    return %c0_i32, %c0_i32_0 : i32, i32
  }
  func.func @transform_3(%arg0: i32) -> (i32, i32) {
    %c0_i32 = arith.constant 0 : i32
    %c0_i32_0 = arith.constant 0 : i32
    %c0_i32_1 = arith.constant 0 : i32
    return %c0_i32, %c0_i32_0 : i32, i32
  }
  func.func @transform_4(%arg0: i32) -> (i32, i32) {
    %c0_i32 = arith.constant 0 : i32
    %c0_i32_0 = arith.constant 0 : i32
    %c0_i32_1 = arith.constant 0 : i32
    return %c0_i32, %c0_i32_0 : i32, i32
  }
  func.func @transform_5(%arg0: i32) -> (i32, i32) {
    %c0_i32 = arith.constant 0 : i32
    %c0_i32_0 = arith.constant 0 : i32
    %c0_i32_1 = arith.constant 0 : i32
    return %c0_i32, %c0_i32_0 : i32, i32
  }
  func.func @transform_6(%arg0: i32) -> (i32, i32, i32) {
    %c0_i32 = arith.constant 0 : i32
    %c0_i32_0 = arith.constant 0 : i32
    %c0_i32_1 = arith.constant 0 : i32
    return %arg0, %c0_i32, %c0_i32_0 : i32, i32, i32
  }
}

</mosaic_0001>

<bundles_post_ra>
// kernel: cross_attention.1
= control target key start
LH: loop header
LB: loop body
LE: loop exit
PB: predicated region body
PF: predicated region fallthrough
CT: control target
= control target key end

     0   :  { %11 = vsyncpa [#allocation3], 0  ;;  %s1144_s0 = inlined_call_operand.vmem [shape: f32[2,8,32], index: 0, kind: input, shape index: {}]   ;;  %s1145_s1 = inlined_call_operand.vmem [shape: f32[2,8,32], index: 1, kind: input, shape index: {}]   ;;  %s1146_s2 = inlined_call_operand.vmem [shape: f32[1,32], index: 2, kind: input, shape index: {}]   ;;  %s1147_s3 = inlined_call_operand.vmem [shape: f32[1,32], index: 3, kind: input, shape index: {}]   ;;  %s1148_s4 = inlined_call_operand.vmem [shape: f32[32,32], index: 4, kind: input, shape index: {}]   ;;  %s1149_s5 = inlined_call_operand.vmem [shape: f32[32,64], index: 5, kind: input, shape index: {}]   ;;  %s1150_s6 = inlined_call_operand.hbm [shape: f32[2,8,32], index: 6, kind: output, shape index: {}]  }
   0x1   :  { %13 = vsyncpa [#allocation3 + $0x1], 0  ;;  %s980_s21 = smov 0   ;;  %s982_s22 = smov 0  }
   0x2   :  { %s984_s23 = smov 0   ;;  %s986_s24 = smov 0  }
   0x3 LB: > { %s1001_s25 = sadd.s32 4294967295, %s933_s24   ;;  %s777_s26 = sadd.s32 4294967294, %s933_s24   ;;  %s933_s24 = sphi %s986_s24, %s1156_s24   ;;  %s929_s23 = sphi %s984_s23, %s1155_s23   ;;  %s925_s22 = sphi %s982_s22, %s1154_s22   ;;  %s921_s21 = sphi %s980_s21, %s1153_s21  }
   0x4   : > { %s1005_s27 = sadd.s32 1, %s933_s24   ;;  %s162_s28 = sadd.s32 1, %s929_s23 }
   0x5   : > { %s159_s29 = ssub.s32 %s933_s24, %s1005_s27  ;;  %p172_p0 = scmp.ne.s32.totalorder %s929_s23, %s925_s22 }
   0x6   : > { %p160_p1 = scmp.eq.s32.totalorder %s159_s29, 0  ;;  %p173_p2 = scmp.eq.s32.totalorder %s1001_s25, 1 }
   0x7   : > { %p178_p3 = scmp.ne.s32.totalorder %s925_s22, %s921_s21  ;;  %p179_p4 = scmp.eq.s32.totalorder %s777_s26, 1 }
   0x8   : > { %s1016_s30 = scalar_select %p160_p1, %s929_s23, %s162_s28  }
   0x9   : > { %p1018_p5 = por %p173_p2, %p172_p0  ;;  %p1022_p6 = por %p179_p4, %p178_p3 }
   0xa   : > { %p780_p7 = scmp.ge.s32.totalorder %s933_s24, 1  ;;  %p223_p8 = scmp.lt.s32.totalorder %s933_s24, 3 }
   0xc   : > { %p224_p9 = pnand %p780_p7, %p223_p8 }
   0xd   : > { %p256_p10 = scmp.lt.s32.totalorder (!%p224_p9), %s1001_s25, 1  ;;  %s936_s29 = smov (!%p224_p9), 120  }
   0xe   : > { %227 = sbr.rel (%p224_p9) target bundleno = 1374 (0x55e), region = 44  ;;  %s938_s11 = smov (!%p224_p9), 112  }
   0xf   : > { %s939_s12 = smov (!%p224_p9), 80   ;;  %s941_s14 = smov (!%p224_p9), 72  }
  0x10   : > { %s943_s15 = smov (!%p224_p9), 8   ;;  %s944_s16 = smov (!%p224_p9), 24  }
  0x11   : > { %s253_s17 = sand.u32 (!%p224_p9), 1, %s925_s22   ;;  %s799_s19 = sshll.u32 (!%p224_p9), %s1001_s25, 3 }
  0x12   : > { %s781_s18 = sshll.u32 (!%p224_p9), %s253_s17, 3 }
  0x13   : > { %s257_s9 = scalar_select %p256_p10, %s1001_s25, 1  ;;  %vm266_vm0 = vcmask 261120   ;;  %v332_v4 = vld [vmem:[%s1149_s5 + $0x18] sm:$0xff]  ;;  %v331_v5 = vld [vmem:[%s1149_s5 + $0x10] sm:$0xff]  ;;  %v330_v6 = vld [vmem:[%s1149_s5 + $0x8] sm:$0xff]  ;;  %vm356_vm4 = vcmask 64512  }
  0x14   : > { %348 = vmatpush.msra.mxu1 %v332_v4  ;;  %v329_v7 = vld [vmem:[%s1149_s5] sm:$0xff]  ;;  %v305_v9 = vld [vmem:[%s1148_s4 + $0x18] sm:$0xff]  ;;  %v304_v10 = vld [vmem:[%s1148_s4 + $0x10] sm:$0xff]  ;;  %s691_s25 = scalar_lea.sflag [#allocation3], %s253_s17 }
  0x15   : > { %s782_s10 = sshll.u32 %s257_s9, 3  ;;  %321 = vmatpush.msra.mxu0 %v305_v9  ;;  %v303_v12 = vld [vmem:[%s1148_s4 + $0x8] sm:$0xff]  ;;  %v302_v13 = vld [vmem:[%s1148_s4] sm:$0xff]  ;;  %s937_s9 = smov 104  }
  0x16   : > { %s259_s13 = scalar_lea.vmem %s1144_s0, %s782_s10  ;;  %349 = vmatpush.msra.mxu1 %v331_v5  ;;  %s263_s28 = scalar_lea.vmem %s1145_s1, %s782_s10  ;;  %v851_v25 = vld [vmem:[%s1146_s2] ss:$0 sm:$0xff] }
  0x17   : > { %v1033_v0 = vld [vmem:[%s259_s13] sm:$0xff]  ;;  %322 = vmatpush.msra.mxu0 %v304_v10  ;;  %s940_s13 = smov 88   ;;  %s942_s10 = smov 16  }
  0x18   : > { %v267_v1 = vsel %vm266_vm0, %v1033_v0, 0.0  ;;  %v271_v2 = vmul.f32 %v1033_v0, %v1033_v0  ;;  %350 = vmatpush.msra.mxu1 %v330_v6  ;;  %v265_v8 = vld [vmem:[%s263_s28] sm:$0xff]  ;;  %s935_s28 = smov 96  }
  0x19   : > { %268 = vadd.xlane.f32.xlu0 %v267_v1  ;;  %323 = vmatpush.msra.mxu0 %v303_v12  ;;  %v852_v29 = vld [vmem:[%s1147_s3] ss:$0 sm:$0xff] }
  0x1a   : > { %v272_v3 = vsel %vm266_vm0, %v271_v2, 0.0  ;;  %351 = vmatpush.msra.mxu1 %v329_v7 }
  0x1b   : > { %785 = vmatmul.msk.f32.vlgmr.msra.gmra.mxu1 %vm266_vm0, %v265_v8  ;;  %324 = vmatpush.msra.mxu0 %v302_v13 }
  0x21   : > { %273 = vadd.xlane.f32.xlu0 %v272_v3 }
  0x8c   : > { %v269_v11 = vpop.xlane.xlu0 %268 }
  0x8d   : > { %v270_v14 = vmul.f32 0.03125, %v269_v11 }
  0x8f   : > { %v276_v16 = vmul.f32 %v270_v14, %v270_v14 }
  0x94   : > { %v274_v15 = vpop.xlane.xlu0 %273 }
  0x95   : > { %v275_v17 = vmul.f32 0.03125, %v274_v15 }
  0x97   : > { %v277_v18 = vsub.f32 %v275_v17, %v276_v16 }
  0x98   : > { %v1076_v34 = vpop.f32.mrf.mxu1 }
  0x99   : > { %v278_v19 = vadd.f32 1e-05, %v277_v18  ;;  %408 = vrot.lane.b32.xlu2 %v1076_v34, %s935_s28  ;;  %786 = vmatpush.xpose.msk.msra.mxu2 %vm356_vm4, %v1076_v34  ;;  %s701_s28 = scalar_lea.hbm %s1150_s6, %s799_s19 }
  0x9b   : > { %853 = vrsqrt.f32 %v278_v19  ;;  %vm285_vm2 = vweird.f32 %v278_v19 }
  0xa1   : > { %v854_v20 = vpop.eup %853  ;;  %436 = vrot.lane.b32.xlu2 %v1076_v34, %s936_s29 }
  0xa2   : > { %v280_v21 = vmul.f32 %v854_v20, %v278_v19  ;;  %vm286_vm1 = vweird.f32 %v854_v20 }
  0xa3   : > { %vm287_vm3 = vmor %vm285_vm2, %vm286_vm1 }
  0xa4   : > { %v281_v22 = vmul.f32 %v854_v20, %v280_v21 }
  0xa6   : > { %v282_v23 = vmul.f32 0.5, %v281_v22 }
  0xa8   : > { %v283_v24 = vsub.f32 1.5, %v282_v23 }
  0xaa   : > { %v284_v26 = vmul.f32 %v854_v20, %v283_v24 }
  0xac   : > { %v288_v27 = vsel %vm287_vm3, %v854_v20, %v284_v26 }
  0xad   : > { %v294_v28 = vmul.f32 %v851_v25, %v288_v27 }
  0xaf   : > { %v295_v30 = vmul.f32 %v294_v28, %v270_v14  ;;  %v300_v32 = vmul.f32 %v294_v28, %v1033_v0 }
  0xb1   : > { %v299_v31 = vsub.f32 %v852_v29, %v295_v30 }
  0xb3   : > { %v301_v33 = vadd.f32 %v300_v32, %v299_v31 }
  0xb5   : > { %784 = vmatmul.msk.f32.vlgmr.msra.gmra.mxu0 %vm266_vm0, %v301_v33 }
  0xf3   : > { %v409_v36 = vpop.permute.xlu2 %408 }
  0xf4   : > { %429 = vmatpush.msra.mxu3 %v409_v36 }
  0xfb   : > { %v437_v37 = vpop.permute.xlu2 %436 }
  0xfc   : > { %789 = vmatpush.xpose.msk.msrb.mxu3 %vm356_vm4, %v437_v37 }
 0x132   : > { %v326_v35 = vpop.f32.mrf.mxu0 }
 0x133   : > { %592 = vrot.lane.b32.xlu2 %v326_v35, %s937_s9  ;;  %434 = vrot.lane.b32.xlu0 %v326_v35, %s936_s29  ;;  %s255_s29 = scalar_lea.vmem [#allocation2], %s781_s18 }
 0x134   : > { %787 = vmatmul.msk.f32.vlgmr.msra.gmra.mxu2 %vm356_vm4, %v326_v35 }
 0x13b   : > { %515 = vrot.lane.b32.xlu2 %v1076_v34, %s938_s11 }
 0x143   : > { %513 = vrot.lane.b32.xlu2 %v326_v35, %s938_s11  ;;  %s705_s11 = sshll.u32 %s701_s28, 4  ;;  %s706_s11 = int_to_ptr.hbm [resolvable:$true] %s705_s11 }
 0x18d   : > { %v593_v38 = vpop.permute.xlu2 %592 }
 0x195   : > { %v516_v39 = vpop.permute.xlu2 %515 }
 0x196   : > { %792 = vmatpush.xpose.msk.msrb.mxu0 %vm356_vm4, %v516_v39 }
 0x19d   : > { %v514_v40 = vpop.permute.xlu2 %513 }
 0x19e   : > { %793 = vmatmul.msk.f32.vlgmr.msrb.gmra.mxu0 %vm356_vm4, %v514_v40 }
 0x1a5   : > { %v435_v2 = vpop.permute.xlu0 %434 }
 0x1b7   : > { %v380_v41 = vpop.f32.mrf.mxu2 }
 0x1b8   : > { %v383_v42 = vmul.f32 0.35355338, %v380_v41 }
 0x1ba   : > { %v384_v43 = vsel %vm356_vm4, %v383_v42, -inf }
 0x1bb   : > { %385 = vmax.xlane.f32.xlu1 %v384_v43 }
 0x21b   : > { %v538_v49 = vpop.f32.mrf.mxu0 }
 0x21c   : > { %v541_v50 = vmul.f32 0.35355338, %v538_v49 }
 0x21e   : > { %v542_v51 = vsel %vm356_vm4, %v541_v50, -inf }
 0x22e   : > { %v386_v44 = vpop.xlane.xlu1 %385 }
 0x22f   : > { %v387_v45 = vsub.f32 %v383_v42, %v386_v44 }
 0x231   : > { %v388_v46 = vmul.f32 1.442695, %v387_v45 }
 0x233   : > { %855 = vpow2.f32 %v388_v46 }
 0x239   : > { %v856_v47 = vpop.eup %855 }
 0x23a   : > { %v390_v48 = vsel %vm356_vm4, %v856_v47, 0.0 }
 0x23b   : > { %391 = vadd.xlane.f32.xlu1 %v390_v48 }
 0x254   : > { %594 = vrot.lane.b32.xlu1 %v1076_v34, %s937_s9  ;;  %s703_s9 = sshll.u32 %s255_s29, 4  ;;  %s704_s9 = int_to_ptr.vmem [resolvable:$true] %s703_s9 }
 0x27e   : > { %543 = vmax.xlane.f32.xlu1 %v542_v51 }
 0x2ae   : > { %v392_v52 = vpop.xlane.xlu1 %391 }
 0x2af   : > { %857 = vrcp.f32 %v392_v52  ;;  %v404_v56 = vand.u32 2147483648, %v392_v52  ;;  %v402_v58 = vand.u32 2147483647, %v392_v52  ;;  %vm398_vm6 = vweird.f32 %v392_v52 }
 0x2b1   : > { %v405_v60 = vor.u32 1.1754944e-38, %v404_v56  ;;  %vm403_vm8 = vcmp.eq.f32.partialorder %v402_v58, 8.507059e+37 }
 0x2b5   : > { %v858_v53 = vpop.eup %857 }
 0x2b6   : > { %v394_v54 = vmul.f32 %v858_v53, %v392_v52  ;;  %vm399_vm5 = vweird.f32 %v858_v53 }
 0x2b7   : > { %vm400_vm7 = vmor %vm398_vm6, %vm399_vm5 }
 0x2b8   : > { %v395_v55 = vsub.f32 1.0, %v394_v54 }
 0x2ba   : > { %v396_v57 = vmul.f32 %v858_v53, %v395_v55 }
 0x2bc   : > { %v397_v59 = vadd.f32 %v858_v53, %v396_v57 }
 0x2be   : > { %v401_v61 = vsel %vm400_vm7, %v858_v53, %v397_v59  ;;  %vm684_vm7 = vcmask 130048  }
 0x2bf   : > { %v406_v62 = vsel %vm403_vm8, %v405_v60, %v401_v61  ;;  %vm686_vm8 = vcmask 195584  }
 0x2c0   : > { %v407_v63 = vmul.f32 %v856_v47, %v406_v62 }
 0x2c2   : > { %788 = vmatmul.msk.f32.vlgmr.msra.gmra.mxu3 %vm356_vm4, %v407_v63 }
 0x2c6   : > { %v595_v1 = vpop.permute.xlu1 %594 }
 0x2c7   : > { %795 = vmatpush.xpose.msk.msra.mxu3 %vm356_vm4, %v595_v1 }
 0x2ca   : > { %790 = vmatmul.msk.f32.vlgmr.msrb.gmra.mxu3 %vm356_vm4, %v435_v2 }
 0x2d2   : > { %796 = vmatmul.msk.f32.vlgmr.msra.gmra.mxu3 %vm356_vm4, %v593_v38 }
 0x2f1   : > { %v544_v3 = vpop.xlane.xlu1 %543 }
 0x2f2   : > { %v545_v4 = vsub.f32 %v541_v50, %v544_v3 }
 0x2f4   : > { %v546_v5 = vmul.f32 1.442695, %v545_v4 }
 0x2f6   : > { %859 = vpow2.f32 %v546_v5 }
 0x2fc   : > { %v860_v6 = vpop.eup %859 }
 0x2fd   : > { %v548_v7 = vsel %vm356_vm4, %v860_v6, 0.0 }
 0x2fe   : > { %549 = vadd.xlane.f32.xlu1 %v548_v7 }
 0x317   : > { %566 = vrot.lane.b32.xlu1 %v1076_v34, %s939_s12  ;;  %s885_s12 = sshra.s32 %s706_s11, 4  ;;  %s886_s12 = int_to_ptr.hbm [resolvable:$true] %s885_s12 }
 0x318   : > { %p892_p0 = scmp.lt.s32.totalorder %s886_s12, %s1150_s6 }
 0x345   : > { %v1097_v8 = vpop.f32.mrf.mxu3 }
 0x34d   : > { %v459_v9 = vpop.f32.mrf.mxu3 }
 0x34e   : > { %v462_v10 = vmul.f32 0.35355338, %v459_v9 }
 0x350   : > { %v463_v11 = vsel %vm356_vm4, %v462_v10, -inf }
 0x351   : > { %464 = vmax.xlane.f32.xlu0 %v463_v11 }
 0x355   : > { %v617_v12 = vpop.f32.mrf.mxu3 }
 0x356   : > { %v620_v13 = vmul.f32 0.35355338, %v617_v12 }
 0x358   : > { %v621_v14 = vsel %vm356_vm4, %v620_v13, -inf }
 0x359   : > { %622 = vmax.xlane.f32.xlu2 %v621_v14 }
 0x371   : > { %v550_v15 = vpop.xlane.xlu1 %549 }
 0x372   : > { %861 = vrcp.f32 %v550_v15  ;;  %v562_v21 = vand.u32 2147483648, %v550_v15  ;;  %vm556_vm10 = vweird.f32 %v550_v15  ;;  %v560_v22 = vand.u32 2147483647, %v550_v15 }
 0x374   : > { %v563_v24 = vor.u32 1.1754944e-38, %v562_v21  ;;  %vm561_vm12 = vcmp.eq.f32.partialorder %v560_v22, 8.507059e+37 }
 0x378   : > { %v862_v16 = vpop.eup %861 }
 0x379   : > { %v552_v17 = vmul.f32 %v862_v16, %v550_v15  ;;  %vm557_vm9 = vweird.f32 %v862_v16 }
 0x37a   : > { %vm558_vm11 = vmor %vm556_vm10, %vm557_vm9 }
 0x37b   : > { %v553_v18 = vsub.f32 1.0, %v552_v17 }
 0x37d   : > { %v554_v19 = vmul.f32 %v862_v16, %v553_v18 }
 0x37f   : > { %v555_v20 = vadd.f32 %v862_v16, %v554_v19 }
 0x381   : > { %v559_v23 = vsel %vm558_vm11, %v862_v16, %v555_v20 }
 0x382   : > { %v564_v25 = vsel %vm561_vm12, %v563_v24, %v559_v23 }
 0x383   : > { %v565_v27 = vmul.f32 %v860_v6, %v564_v25 }
 0x389   : > { %v567_v26 = vpop.permute.xlu1 %566 }
 0x38a   : > { %587 = vmatpush.msrb.mxu1 %v567_v26 }
 0x38b   : > { %794 = vmatmul.msk.f32.vlgmr.msrb.gmra.mxu1 %vm356_vm4, %v565_v27 }
 0x3c4   : > { %v465_v28 = vpop.xlane.xlu0 %464 }
 0x3c5   : > { %v466_v29 = vsub.f32 %v462_v10, %v465_v28 }
 0x3c7   : > { %v467_v30 = vmul.f32 1.442695, %v466_v29 }
 0x3c9   : > { %863 = vpow2.f32 %v467_v30 }
 0x3cc   : > { %v623_v31 = vpop.xlane.xlu2 %622 }
 0x3cd   : > { %v624_v32 = vsub.f32 %v620_v13, %v623_v31 }
 0x3cf   : > { %v864_v33 = vpop.eup %863  ;;  %v625_v35 = vmul.f32 1.442695, %v624_v32 }
 0x3d0   : > { %v469_v36 = vsel %vm356_vm4, %v864_v33, 0.0 }
 0x3d1   : > { %865 = vpow2.f32 %v625_v35  ;;  %470 = vadd.xlane.f32.xlu0 %v469_v36 }
 0x3d7   : > { %v866_v37 = vpop.eup %865 }
 0x3d8   : > { %v627_v38 = vsel %vm356_vm4, %v866_v37, 0.0 }
 0x3d9   : > { %628 = vadd.xlane.f32.xlu2 %v627_v38 }
 0x3e5   : > { %487 = vrot.lane.b32.xlu0 %v1076_v34, %s940_s13  ;;  %s887_s13 = scalar_lea.hbm %s886_s12, 8 }
 0x3e6   : > { %p888_p11 = scmp.ne.s32.totalorder %s886_s12, %s887_s13 }
 0x3e8   : > { %p889_p12 = pnand %p888_p11, %p1018_p5 }
 0x3ea   : > { %p890_p13 = pneg %p889_p12 }
 0x3f1   : > { %645 = vrot.lane.b32.xlu2 %v1076_v34, %s941_s14 }
 0x408   : > { %v589_v39 = vpop.f32.mrf.mxu1 }
 0x409   : > { %676 = vrot.lane.b32.xlu2 %v589_v39, %s942_s10 }
 0x444   : > { %v471_v40 = vpop.xlane.xlu0 %470 }
 0x445   : > { %867 = vrcp.f32 %v471_v40  ;;  %v483_v45 = vand.u32 2147483648, %v471_v40  ;;  %v481_v47 = vand.u32 2147483647, %v471_v40  ;;  %vm477_vm14 = vweird.f32 %v471_v40 }
 0x447   : > { %v484_v50 = vor.u32 1.1754944e-38, %v483_v45  ;;  %vm482_vm1 = vcmp.eq.f32.partialorder %v481_v47, 8.507059e+37 }
 0x44b   : > { %v868_v41 = vpop.eup %867 }
 0x44c   : > { %v473_v42 = vmul.f32 %v868_v41, %v471_v40  ;;  %v629_v43 = vpop.xlane.xlu2 %628  ;;  %vm478_vm13 = vweird.f32 %v868_v41 }
 0x44d   : > { %869 = vrcp.f32 %v629_v43  ;;  %vm479_vm15 = vmor %vm477_vm14, %vm478_vm13  ;;  %v641_v55 = vand.u32 2147483648, %v629_v43  ;;  %v639_v58 = vand.u32 2147483647, %v629_v43  ;;  %vm635_vm3 = vweird.f32 %v629_v43 }
 0x44e   : > { %v474_v44 = vsub.f32 1.0, %v473_v42 }
 0x44f   : > { %v642_v61 = vor.u32 1.1754944e-38, %v641_v55  ;;  %vm640_vm6 = vcmp.eq.f32.partialorder %v639_v58, 8.507059e+37 }
 0x450   : > { %v475_v46 = vmul.f32 %v868_v41, %v474_v44 }
 0x452   : > { %v476_v48 = vadd.f32 %v868_v41, %v475_v46 }
 0x453   : > { %v870_v49 = vpop.eup %869 }
 0x454   : > { %v631_v34 = vmul.f32 %v870_v49, %v629_v43  ;;  %v480_v51 = vsel %vm479_vm15, %v868_v41, %v476_v48  ;;  %vm636_vm2 = vweird.f32 %v870_v49  ;;  %v646_v59 = vpop.permute.xlu2 %645 }
 0x455   : > { %v485_v52 = vsel %vm482_vm1, %v484_v50, %v480_v51  ;;  %vm637_vm5 = vmor %vm635_vm3, %vm636_vm2 }
 0x456   : > { %v632_v53 = vsub.f32 1.0, %v631_v34  ;;  %v486_v54 = vmul.f32 %v864_v33, %v485_v52 }
 0x457   : > { %v488_v56 = vpop.permute.xlu0 %487 }
 0x458   : > { %v633_v57 = vmul.f32 %v870_v49, %v632_v53  ;;  %508 = vmatpush.msrb.mxu2 %v488_v56 }
 0x459   : > { %791 = vmatmul.msk.f32.vlgmr.msrb.gmra.mxu2 %vm356_vm4, %v486_v54 }
 0x45a   : > { %v634_v60 = vadd.f32 %v870_v49, %v633_v57  ;;  %666 = vmatpush.msra.mxu2 %v646_v59 }
 0x45c   : > { %v638_v62 = vsel %vm637_vm5, %v870_v49, %v634_v60 }
 0x45d   : > { %v643_v63 = vsel %vm640_vm6, %v642_v61, %v638_v62 }
 0x45e   : > { %v644_v1 = vmul.f32 %v866_v37, %v643_v63 }
 0x461   : > { %797 = vmatmul.msk.f32.vlgmr.msra.gmra.mxu2 %vm356_vm4, %v644_v1 }
 0x463   : > { %v677_v6 = vpop.permute.xlu2 %676 }
 0x4dc   : > { %v510_v2 = vpop.f32.mrf.mxu2 }
 0x4dd   : > { %672 = vrot.lane.b32.xlu0 %v510_v2, %s943_s15  ;;  %s891_s15 = scalar_lea.hbm %s1150_s6, 16 }
 0x4de   : > { %p893_p1 = scmp.lt.s32.totalorder %s891_s15, %s887_s13 }
 0x4e0   : > { %p894_p2 = por %p893_p1, %p892_p0 }
 0x4e2   : > { %p895_p3 = pnand %p894_p2, %p890_p13 }
 0x4e4   : > { %v668_v3 = vpop.f32.mrf.mxu2 }
 0x4e5   : > { %680 = vrot.lane.b32.xlu0 %v668_v3, %s944_s16 }
 0x54f   : > { %v673_v4 = vpop.permute.xlu0 %672 }
 0x550   : > { %v683_v5 = vsel %vm356_vm4, %v1097_v8, %v673_v4 }
 0x551   : > { %v685_v9 = vsel %vm684_vm7, %v683_v5, %v677_v6 }
 0x557   : > { %v681_v7 = vpop.permute.xlu0 %680 }
 0x558   : > { %v687_v10 = vsel %vm686_vm8, %v685_v9, %v681_v7 }
 0x559   : > { %v688_v11 = vadd.f32 %v687_v10, %v1033_v0 }
 0x55b   : > { %689 = vst.msk [vmem:[%s255_s29] sm:$0xff] %vm266_vm0, %v688_v11 }
 0x55c   : > { %898 = shalt.err (!%p895_p3)
}
 0x55d   : > { %802 = dma.vmem_to_hbm [thread:$0]  (%p1018_p5), %s704_s9, 128, %s706_s11, %s691_s25  }
 0x55e PF: > { %p808_p4 = scmp.ge.s32.totalorder %s933_s24, 2  ;;  %s717_s17 = sand.u32 1, %s921_s21  }
 0x55f   : > { %s718_s19 = scalar_lea.sflag [#allocation3], %s717_s17 }
 0x560   : > { %p805_p7 = pnand %p808_p4, %p1022_p6 }
 0x562   : > { %p806_p8 = pneg %p805_p7 }
 0x564   : > { %916 = dma.done.wait (%p806_p8), %s718_s19, 128  }
 0x565   : > { %918 = vsyncadd (%p806_p8), %s718_s19, 4294967168  ;;  %p16_p9 = scmp.ge.s32.totalorder %s1005_s27, 4   ;;  %s1153_s21 = smov %s925_s22 }
 0x566   : > { %s1154_s22 = smov %s929_s23  ;;  %s1155_s23 = smov %s1016_s30 }
 0x567   : > { %s1156_s24 = smov %s1005_s27  ;;  %18 = sbr.rel (!%p16_p9) target bundleno = 3 (0x3), region = 82 }
 0x56c   :  { %724 = vsyncpa [#allocation3], 1 }
 0x56d   :  { %726 = vsyncpa [#allocation3 + $0x1], 1 }

</bundles_post_ra>
